<compile_context>
chip_gen: v7x
topology: tpu7x:2x2x1
jax: 0.10.0
libtpu: 0.0.40
codegen_flags: <defaults>
</compile_context>

<pallas_src>
import math
import functools

import jax
import jax.numpy as jnp
from jax.experimental import pallas as pl
from jax.experimental.pallas import tpu as pltpu

OMEGA = 10.0
EPSILON = 2.0
INV_EPSILON = 1.0 / EPSILON
# C = omega - omega * log(1 + omega / epsilon)
C_CONST = OMEGA - OMEGA * math.log(1.0 + OMEGA / EPSILON)

LANES = 128
# ~2 MiB per input block -> TM = 4096 (f32) / 8192 (bf16) / 16384 (int8-like).
TARGET_BLOCK_BYTES = 2 * 1024 * 1024
# 2 inputs x 2 pipeline buffers x 2 MiB = 8 MiB steady-state footprint; 32 MiB
# is safe on every chip (== v7x/v6e scoped default, raises v5e's 16 MiB).
VMEM_LIMIT_BYTES = 32 * 1024 * 1024


def _num_tensorcores_per_chip():
    """Best-effort detection: only multi-TC chips (v7x+) get the 2-way split."""
    try:
        kind = (jax.devices()[0].device_kind or "").lower()
    except Exception:
        return 1
    # v5e / v6e are single-TensorCore; v7x exposes 2 TCs per chip.
    return 2 if "v7" in kind else 1


def _wing_sum_kernel(p_ref, t_ref, out_ref, *, tm, valid_rows, bpc,
                     total_blocks, need_mask):
    c = pl.program_id(0)
    b = pl.program_id(1)

    @pl.when(b == 0)
    def _():
        out_ref[...] = jnp.zeros_like(out_ref)

    # Keep the f32 upcast: the PyTorch reference computes in f32, and the cast
    # cost is hidden under DMA on v5e/v6e (bf16-native delta on v7x was judged
    # not worth the precision drift).
    p = p_ref[...].astype(jnp.float32)
    t = t_ref[...].astype(jnp.float32)
    delta = jnp.abs(t - p)

    # Piecewise wing loss: one EUP log1p + a handful of VPU ops per element.
    loss = jnp.where(
        delta < OMEGA,
        OMEGA * jnp.log1p(delta * INV_EPSILON),
        delta - C_CONST,
    )

    def accumulate(x):
        # (tm, 128) -> (tm//8, 8, 128), reduce leading dim: pure VPU vreg adds
        # into the resident (1, 8, 128) output block; no per-step XLU reduce.
        out_ref[...] += x.reshape(tm // 8, 8, LANES).sum(axis=0)[None]

    if need_mask:
        blk = c * bpc + b  # unclamped logical block index

        # Hot path: fully-valid blocks accumulate with zero masking overhead.
        @pl.when(blk < total_blocks - 1)
        def _():
            accumulate(loss)

        # Boundary block (partial rows) and overhang duplicates of the slice
        # split: zero out rows past the end of the (rows, 128) slab.
        @pl.when(blk >= total_blocks - 1)
        def _():
            row_id = blk * tm + jax.lax.broadcasted_iota(
                jnp.int32, (tm, LANES), 0)
            # Must stay a select: garbage rows can hold NaN from log1p(x<-1)
            # and NaN * 0 = NaN would poison the sum.
            accumulate(jnp.where(row_id < valid_rows, loss, 0.0))
    else:
        accumulate(loss)


@functools.partial(jax.jit, static_argnames=("reduction",))
def wing_loss(pred, target, reduction="mean"):
    if pred.shape != target.shape:
        raise ValueError("pred and target must have the same shape")
    if reduction not in ("mean", "sum"):
        # TODO(synk): reduction='none' in PyTorch returns the concatenated
        # (mask-permuted) per-element losses; only 'mean'/'sum' supported here.
        raise ValueError(f"unsupported reduction: {reduction!r}")

    if pred.dtype != target.dtype:
        dt = jnp.promote_types(pred.dtype, target.dtype)
        pred, target = pred.astype(dt), target.astype(dt)

    n_valid = pred.size
    itemsize = jnp.dtype(pred.dtype).itemsize
    sub = {4: 8, 2: 16, 1: 32}.get(itemsize, 8)  # min sublane tile per dtype

    # Keep native dtype (bf16 stays bf16 -> half the HBM bytes); cast in-kernel.
    p_flat = pred.reshape(-1)
    t_flat = target.reshape(-1)

    rows = -(-n_valid // LANES)
    pad = rows * LANES - n_valid
    if pad:
        # Rare ragged case only: pad both identically with zeros
        # (delta = 0 -> loss contribution = 0).
        p_flat = jnp.pad(p_flat, (0, pad))
        t_flat = jnp.pad(t_flat, (0, pad))
    p2 = p_flat.reshape(rows, LANES)
    t2 = t_flat.reshape(rows, LANES)

    # Block rows: ~TARGET_BLOCK_BYTES per input block, multiple of `sub`,
    # clamped to the (rounded-up) row count for small inputs.
    tm_target = max(TARGET_BLOCK_BYTES // (LANES * itemsize), sub)
    tm = min(tm_target, -(-rows // sub) * sub)
    tm = -(-tm // sub) * sub

    total_blocks = -(-rows // tm)
    # Single-TC chips (v5e/v6e): one slice -> no duplicate overhang blocks and
    # the mask path only triggers for a genuinely ragged last block.
    n_slices = min(_num_tensorcores_per_chip(), total_blocks)
    bpc = -(-total_blocks // n_slices)           # blocks per slice
    need_mask = (n_slices * bpc * tm) != rows

    kernel = functools.partial(
        _wing_sum_kernel, tm=tm, valid_rows=rows, bpc=bpc,
        total_blocks=total_blocks, need_mask=need_mask)

    # Clamp the block index so overhang iterations of the slice split stay in
    # bounds (their contribution is masked to zero in-kernel).
    in_map = lambda c, b: (jnp.minimum(c * bpc + b, total_blocks - 1), 0)

    partials = pl.pallas_call(
        kernel,
        out_shape=jax.ShapeDtypeStruct((n_slices, 8, LANES), jnp.float32),
        grid_spec=pltpu.PrefetchScalarGridSpec(
            num_scalar_prefetch=0,
            grid=(n_slices, bpc),
            in_specs=[
                pl.BlockSpec((tm, LANES), in_map),
                pl.BlockSpec((tm, LANES), in_map),
            ],
            out_specs=pl.BlockSpec((1, 8, LANES), lambda c, b: (c, 0, 0)),
        ),
        compiler_params=pltpu.CompilerParams(
            # TODO(synk): on v7x, confirm in the Mosaic dump that "parallel"
            # shards the size-2 slice axis across both TensorCores; if not,
            # switch that axis to pltpu.CORE_PARALLEL.
            dimension_semantics=("parallel", "arbitrary"),
            vmem_limit_bytes=VMEM_LIMIT_BYTES,
        ),
        cost_estimate=pl.CostEstimate(
            flops=8 * n_valid,
            transcendentals=n_valid,
            bytes_accessed=2 * n_valid * itemsize + n_slices * 8 * LANES * 4,
        ),
    )(p2, t2)

    total = jnp.sum(partials)  # tiny (slices, 8, 128) reduce in plain JAX
    if reduction == "mean":
        return total / jnp.float32(n_valid)
    return total


def _wing_loss_ref(pred, target, reduction="mean"):
    delta = jnp.abs(target.astype(jnp.float32) - pred.astype(jnp.float32))
    loss = jnp.where(
        delta < OMEGA, OMEGA * jnp.log1p(delta / EPSILON), delta - C_CONST
    )
    return jnp.mean(loss) if reduction == "mean" else jnp.sum(loss)


if __name__ == "__main__":
    key = jax.random.PRNGKey(0)
    k1, k2, k3, k4 = jax.random.split(key, 4)

    # Landmark-regression-like inputs; spread values so both wing branches hit.
    pred = jax.random.normal(k1, (2, 4, 16, 16), dtype=jnp.float32) * 8.0
    target = jax.random.normal(k2, (2, 4, 16, 16), dtype=jnp.float32) * 8.0

    out_mean = jax.block_until_ready(wing_loss(pred, target, reduction="mean"))
    out_sum = jax.block_until_ready(wing_loss(pred, target, reduction="sum"))
    ref_mean = _wing_loss_ref(pred, target, reduction="mean")
    ref_sum = _wing_loss_ref(pred, target, reduction="sum")
    assert jnp.allclose(out_mean, ref_mean, rtol=1e-5, atol=1e-5), (out_mean, ref_mean)
    assert jnp.allclose(out_sum, ref_sum, rtol=1e-5, atol=1e-4), (out_sum, ref_sum)

    # Ragged, multi-block case: exercises the gated boundary mask, the pad
    # path, and unmasked steady-state blocks at the full TM block size.
    pred2 = jax.random.normal(k3, (8, 1024, 129), dtype=jnp.float32) * 8.0
    target2 = jax.random.normal(k4, (8, 1024, 129), dtype=jnp.float32) * 8.0
    out2 = jax.block_until_ready(wing_loss(pred2, target2, reduction="mean"))
    ref2 = _wing_loss_ref(pred2, target2, reduction="mean")
    assert jnp.allclose(out2, ref2, rtol=1e-4, atol=1e-4), (out2, ref2)

    # bf16 path: native-dtype streaming, f32 math in-kernel.
    out3 = jax.block_until_ready(
        wing_loss(pred2.astype(jnp.bfloat16), target2.astype(jnp.bfloat16)))
    ref3 = _wing_loss_ref(pred2.astype(jnp.bfloat16), target2.astype(jnp.bfloat16))
    assert jnp.allclose(out3, ref3, rtol=1e-4, atol=1e-4), (out3, ref3)

    print("KERNEL_OK")
</pallas_src>

<mosaic_0001>
module attributes {stable_mosaic.version = 11 : i64} {
  func.func @_wing_sum_kernel(%arg0: i32, %arg1: i32, %arg2: memref<16x128xf32, #tpu.memory_space<vmem>>, %arg3: memref<16x128xf32, #tpu.memory_space<vmem>>, %arg4: memref<1x8x128xf32, #tpu.memory_space<vmem>>) attributes {dimension_semantics = [#tpu.dimension_semantics<parallel>, #tpu.dimension_semantics<arbitrary>], iteration_bounds = array<i64: 1, 1>, scalar_prefetch = 0 : i64, scratch_operands = 0 : i64, tpu.core_type = #tpu.core_type<tc>, window_params = [{transform_indices = @transform_0, window_bounds = array<i64: 16, 128>}, {transform_indices = @transform_1, window_bounds = array<i64: 16, 128>}, {transform_indices = @transform_2, window_bounds = array<i64: 1, 8, 128>}]} {
    %c0_i32 = arith.constant 0 : i32
    %0 = arith.cmpi eq, %arg1, %c0_i32 : i32
    %1 = arith.extui %0 : i1 to i32
    %c0_i32_0 = arith.constant 0 : i32
    %2 = arith.cmpi ne, %1, %c0_i32_0 : i32
    scf.if %2 {
      %cst_14 = arith.constant 0.000000e+00 : f32
      %23 = vector.broadcast %cst_14 : f32 to vector<1x8x128xf32>
      %c0_15 = arith.constant 0 : index
      %c0_16 = arith.constant 0 : index
      %c0_17 = arith.constant 0 : index
      %24 = vector.load %arg4[%c0_15, %c0_16, %c0_17] : memref<1x8x128xf32, #tpu.memory_space<vmem>>, vector<1x8x128xf32>
      tpu.vector_store %arg4[%c0_15, %c0_16, %c0_17], %23 {strides = array<i32>} : memref<1x8x128xf32, #tpu.memory_space<vmem>>, vector<1x8x128xf32>,
    } else {
    }
    %c0 = arith.constant 0 : index
    %c0_1 = arith.constant 0 : index
    %3 = vector.load %arg2[%c0, %c0_1] : memref<16x128xf32, #tpu.memory_space<vmem>>, vector<16x128xf32>
    %c0_2 = arith.constant 0 : index
    %c0_3 = arith.constant 0 : index
    %4 = vector.load %arg3[%c0_2, %c0_3] : memref<16x128xf32, #tpu.memory_space<vmem>>, vector<16x128xf32>
    %5 = arith.subf %4, %3 : vector<16x128xf32>
    %6 = math.absf %5 : vector<16x128xf32>
    %cst = arith.constant 1.000000e+01 : f32
    %7 = vector.broadcast %cst : f32 to vector<16x128xf32>
    %8 = arith.cmpf olt, %6, %7 : vector<16x128xf32>
    %cst_4 = arith.constant 5.000000e-01 : f32
    %9 = vector.broadcast %cst_4 : f32 to vector<16x128xf32>
    %10 = arith.mulf %6, %9 : vector<16x128xf32>
    %11 = math.log1p %10 : vector<16x128xf32>
    %cst_5 = arith.constant 1.000000e+01 : f32
    %12 = vector.broadcast %cst_5 : f32 to vector<16x128xf32>
    %13 = arith.mulf %12, %11 : vector<16x128xf32>
    %cst_6 = arith.constant -7.9175949 : f32
    %14 = vector.broadcast %cst_6 : f32 to vector<16x128xf32>
    %15 = arith.subf %6, %14 : vector<16x128xf32>
    %16 = arith.select %8, %13, %15 : vector<16x128xi1>, vector<16x128xf32>
    %c0_7 = arith.constant 0 : index
    %c0_8 = arith.constant 0 : index
    %c0_9 = arith.constant 0 : index
    %17 = vector.load %arg4[%c0_7, %c0_8, %c0_9] : memref<1x8x128xf32, #tpu.memory_space<vmem>>, vector<1x8x128xf32>
    %18 = vector.shape_cast %16 : vector<16x128xf32> to vector<2x8x128xf32>
    %cst_10 = arith.constant dense<0.000000e+00> : vector<8x128xf32>
    %19 = vector.multi_reduction <add>, %18, %cst_10 [0] : vector<2x8x128xf32> to vector<8x128xf32>
    %20 = vector.shape_cast %19 : vector<8x128xf32> to vector<1x8x128xf32>
    %21 = arith.addf %17, %20 : vector<1x8x128xf32>
    %c0_11 = arith.constant 0 : index
    %c0_12 = arith.constant 0 : index
    %c0_13 = arith.constant 0 : index
    %22 = vector.load %arg4[%c0_11, %c0_12, %c0_13] : memref<1x8x128xf32, #tpu.memory_space<vmem>>, vector<1x8x128xf32>
    tpu.vector_store %arg4[%c0_11, %c0_12, %c0_13], %21 {strides = array<i32>} : memref<1x8x128xf32, #tpu.memory_space<vmem>>, vector<1x8x128xf32>,
    return
  }
  func.func @transform_0(%arg0: i32, %arg1: i32) -> (i32, i32) {
    %c1_i32 = arith.constant 1 : i32
    %0 = arith.muli %arg0, %c1_i32 : i32
    %1 = arith.addi %0, %arg1 : i32
    %c0_i32 = arith.constant 0 : i32
    %2 = arith.minsi %1, %c0_i32 : i32
    %c0_i32_0 = arith.constant 0 : i32
    %c0_i32_1 = arith.constant 0 : i32
    return %2, %c0_i32_0 : i32, i32
  }
  func.func @transform_1(%arg0: i32, %arg1: i32) -> (i32, i32) {
    %c1_i32 = arith.constant 1 : i32
    %0 = arith.muli %arg0, %c1_i32 : i32
    %1 = arith.addi %0, %arg1 : i32
    %c0_i32 = arith.constant 0 : i32
    %2 = arith.minsi %1, %c0_i32 : i32
    %c0_i32_0 = arith.constant 0 : i32
    %c0_i32_1 = arith.constant 0 : i32
    return %2, %c0_i32_0 : i32, i32
  }
  func.func @transform_2(%arg0: i32, %arg1: i32) -> (i32, i32, i32) {
    %c0_i32 = arith.constant 0 : i32
    %c0_i32_0 = arith.constant 0 : i32
    %c0_i32_1 = arith.constant 0 : i32
    return %arg0, %c0_i32, %c0_i32_0 : i32, i32, i32
  }
}

</mosaic_0001>

<bundles_post_ra>
// kernel: wing_loss.1
= control target key start
LH: loop header
LB: loop body
LE: loop exit
PB: predicated region body
PF: predicated region fallthrough
CT: control target
= control target key end

     0   :  { %s173_s0 = inlined_call_operand.vmem [shape: f32[16,128], index: 0, kind: input, shape index: {}]   ;;  %s174_s1 = inlined_call_operand.vmem [shape: f32[16,128], index: 1, kind: input, shape index: {}]   ;;  %s175_s2 = inlined_call_operand.vmem [shape: f32[1,8,128], index: 2, kind: output, shape index: {}]  }
   0x1   :  { %v80_v0 = vld [vmem:[%s173_s0] sm:$0xff]  ;;  %v81_v1 = vld [vmem:[%s173_s0 + $0x8] sm:$0xff] }
   0x2   :  { %v82_v2 = vld [vmem:[%s174_s1] sm:$0xff]  ;;  %v83_v3 = vld [vmem:[%s174_s1 + $0x8] sm:$0xff] }
   0x3   :  { %v84_v4 = vsub.f32 %v82_v2, %v80_v0  ;;  %v85_v5 = vsub.f32 %v83_v3, %v81_v1 }
   0x5   :  { %v86_v6 = vand.u32 2147483647, %v84_v4  ;;  %v87_v7 = vand.u32 2147483647, %v85_v5 }
   0x7   :  { %v90_v8 = vmul.f32 0.5, %v86_v6  ;;  %v91_v9 = vmul.f32 0.5, %v87_v7  ;;  %v136_v24 = vadd.f32 7.917595, %v86_v6  ;;  %vm88_vm2 = vcmp.lt.f32.partialorder %v86_v6, 10.0 }
   0x8   :  { %v137_v26 = vadd.f32 7.917595, %v87_v7  ;;  %vm89_vm3 = vcmp.lt.f32.partialorder %v87_v7, 10.0 }
   0x9   :  { %v92_v10 = vadd.f32 1.0, %v90_v8  ;;  %v101_v11 = vadd.f32 1.0, %v91_v9  ;;  %v95_v12 = vmul.f32 -0.5, %v90_v8  ;;  %v104_v13 = vmul.f32 -0.5, %v91_v9 }
   0xa   :  { %v98_v15 = vand.u32 2147483647, %v90_v8  ;;  %v107_v17 = vand.u32 2147483647, %v91_v9 }
   0xb   :  { %139 = vlog2.f32 %v92_v10  ;;  %v96_v14 = vadd.f32 1.0, %v95_v12  ;;  %v105_v16 = vadd.f32 1.0, %v104_v13 }
   0xc   :  { %141 = vlog2.f32 %v101_v11  ;;  %vm99_vm0 = vcmp.lt.f32.partialorder %v98_v15, 0.0004427343  ;;  %vm108_vm1 = vcmp.lt.f32.partialorder %v107_v17, 0.0004427343 }
   0xd   :  { %v97_v18 = vmul.f32 %v96_v14, %v90_v8  ;;  %v106_v20 = vmul.f32 %v105_v16, %v91_v9 }
  0x15   :  { %v140_v19 = vpop.eup %139 }
  0x16   :  { %v142_v21 = vpop.eup %141  ;;  %v94_v22 = vmul.f32 0.6931472, %v140_v19 }
  0x17   :  { %v103_v23 = vmul.f32 0.6931472, %v142_v21 }
  0x18   :  { %v100_v25 = vsel %vm99_vm0, %v97_v18, %v94_v22 }
  0x19   :  { %v109_v27 = vsel %vm108_vm1, %v106_v20, %v103_v23  ;;  %v110_v28 = vmul.f32 10.0, %v100_v25 }
  0x1a   :  { %v111_v29 = vmul.f32 10.0, %v109_v27 }
  0x1b   :  { %v114_v30 = vsel %vm88_vm2, %v110_v28, %v136_v24 }
  0x1c   :  { %v115_v31 = vsel %vm89_vm3, %v111_v29, %v137_v26 }
  0x1d   :  { %v117_v32 = vadd.f32 %v115_v31, %v114_v30 }
  0x1f   :  { %119 = vst [vmem:[%s175_s2] sm:$0xff] %v117_v32 }

</bundles_post_ra>
